<compile_context>
chip_gen: v7x
topology: tpu7x:2x2x1
jax: 0.10.0
libtpu: 0.0.40
codegen_flags: <defaults>
</compile_context>

<pallas_src>
import functools

import jax
import jax.numpy as jnp
from jax.experimental import pallas as pl
from jax.experimental.pallas import tpu as pltpu


def _round_up(v, m):
    return ((v + m - 1) // m) * m


def _sigmoid_1eup(x):
    # sigmoid(x) == 0.5 * tanh(0.5 * x) + 0.5  -> 1 EUP op + a VPU fma
    # (instead of exp + reciprocal = 2 EUP ops).
    return 0.5 * jnp.tanh(0.5 * x) + 0.5


def lstm_cell_kernel(xh_ref, c0_ref, w_ref, b_ref, h1_ref, c1_ref, *, hp):
    # Single fused MXU contraction over K = I + H, f32 accumulate.
    gates = jnp.dot(xh_ref[...], w_ref[...], preferred_element_type=jnp.float32)
    gates = gates + b_ref[...]                       # (tb, 4*hp), pre-summed bias

    # 128-aligned gate slices -> full-vreg VPU/EUP pointwise epilogue (f32).
    i_g = _sigmoid_1eup(gates[:, 0 * hp:1 * hp])
    f_g = _sigmoid_1eup(gates[:, 1 * hp:2 * hp])
    g_g = jnp.tanh(gates[:, 2 * hp:3 * hp])
    o_g = _sigmoid_1eup(gates[:, 3 * hp:4 * hp])

    c1 = f_g * c0_ref[...].astype(jnp.float32) + i_g * g_g
    h1 = o_g * jnp.tanh(c1)

    h1_ref[...] = h1.astype(h1_ref.dtype)
    c1_ref[...] = c1.astype(c1_ref.dtype)            # f32 cell state


def prepare_lstm_weights(w_ih, w_hh, b_ih, b_hh, *, mxu_dtype=jnp.bfloat16):
    """Fuse / gate-pad / cast the parameters once; reuse across timesteps.

    Expected layout (matches the PyTorch module): w_ih (I, 4H), w_hh (H, 4H),
    b_ih/b_hh (4H,), with gate-major [i|f|g|o] column blocks.
    Returns (w, b): w is (I+H, 4*Hp) in mxu_dtype, b is (1, 4*Hp) f32,
    where Hp = round_up(H, 128) so every gate block is lane-aligned.
    """
    I, four_h = w_ih.shape
    H = four_h // 4
    assert four_h == 4 * H
    assert w_hh.shape == (H, 4 * H), "w_hh must be (H, 4H), gate-major [i|f|g|o]"
    assert b_ih.size == 4 * H and b_hh.size == 4 * H
    K = I + H
    Hp = _round_up(H, 128)

    w = jnp.concatenate([w_ih, w_hh], axis=0).reshape(K, 4, H)
    w = jnp.pad(w, ((0, 0), (0, 0), (0, Hp - H)))
    w = w.reshape(K, 4 * Hp).astype(mxu_dtype)

    b = (jnp.reshape(b_ih, (4, H)).astype(jnp.float32)
         + jnp.reshape(b_hh, (4, H)).astype(jnp.float32))
    b = jnp.pad(b, ((0, 0), (0, Hp - H))).reshape(1, 4 * Hp)
    return w, b


def lstm_cell_prepared(x, h0, c0, w, b, *, hidden_size, block_b=256,
                       mxu_dtype=jnp.bfloat16):
    """LSTM cell forward with parameters already fused by prepare_lstm_weights."""
    B, I = x.shape
    H = hidden_size
    K = I + H
    Hp = w.shape[1] // 4
    assert w.shape == (K, 4 * Hp) and b.shape == (1, 4 * Hp)

    # Batch tile: multiple of 8; pad B up to a multiple of the tile instead of
    # shrinking the tile to divide B (no tb=8 fallback for awkward batches).
    tb = _round_up(min(max(B, 8), block_b), 8)
    Bp = _round_up(B, tb)
    grid = (Bp // tb,)

    # Fused activation [x || h0] in the MXU dtype; cell state stays f32.
    xh = jnp.concatenate([x, h0], axis=-1).astype(mxu_dtype)      # (B, K)
    xh = jnp.pad(xh, ((0, Bp - B), (0, 0)))                       # (Bp, K)
    c0p = jnp.pad(c0.astype(jnp.float32), ((0, Bp - B), (0, Hp - H)))

    w_itemsize = jnp.dtype(mxu_dtype).itemsize
    cost = pl.CostEstimate(
        flops=2 * Bp * K * 4 * Hp,
        transcendentals=5 * Bp * Hp,                 # 4 gate tanh + tanh(c1)
        bytes_accessed=(Bp * K * w_itemsize          # xh
                        + Bp * Hp * 4                # c0
                        + K * 4 * Hp * w_itemsize    # W
                        + 4 * Hp * 4                 # b
                        + Bp * Hp * x.dtype.itemsize # h1
                        + Bp * Hp * 4),              # c1
    )

    # VMEM budget: single-buffered resident W/b + double-buffered batch tiles.
    vmem_bytes = (K * 4 * Hp * w_itemsize + 4 * Hp * 4
                  + 2 * (tb * K * w_itemsize + tb * Hp * 4
                         + tb * Hp * x.dtype.itemsize + tb * Hp * 4)
                  + (4 << 20))
    vmem_bytes = int(min(max(vmem_bytes, 32 << 20), 64 << 20))

    def run(weight_pipeline_mode):
        res_kw = ({"pipeline_mode": weight_pipeline_mode}
                  if weight_pipeline_mode is not None else {})
        return pl.pallas_call(
            functools.partial(lstm_cell_kernel, hp=Hp),
            out_shape=(jax.ShapeDtypeStruct((Bp, Hp), x.dtype),      # h1
                       jax.ShapeDtypeStruct((Bp, Hp), jnp.float32)), # c1 (f32)
            grid_spec=pltpu.PrefetchScalarGridSpec(
                num_scalar_prefetch=0,
                grid=grid,
                in_specs=[
                    pl.BlockSpec((tb, K), lambda i: (i, 0)),       # xh: per batch tile
                    pl.BlockSpec((tb, Hp), lambda i: (i, 0)),      # c0: per batch tile
                    pl.BlockSpec((K, 4 * Hp), lambda i: (0, 0),    # W : resident
                                 **res_kw),
                    pl.BlockSpec((1, 4 * Hp), lambda i: (0, 0),    # b : resident
                                 **res_kw),
                ],
                out_specs=(pl.BlockSpec((tb, Hp), lambda i: (i, 0)),
                           pl.BlockSpec((tb, Hp), lambda i: (i, 0))),
            ),
            compiler_params=pltpu.CompilerParams(
                dimension_semantics=("parallel",),    # batch tiles megacore-shardable
                vmem_limit_bytes=vmem_bytes),
            cost_estimate=cost,
        )(xh, c0p, w, b)

    try:
        h1p, c1p = run(pl.Buffered(1))    # constant index_map -> 1 buffer is enough
    except Exception:
        # Fallback (default double-buffering) if this jax version rejects
        # pipeline_mode on the resident specs; costs extra VMEM only.
        h1p, c1p = run(None)

    return h1p[:B, :H], c1p[:B, :H]


def lstm_cell(x, h0, c0, w_ih, w_hh, b_ih, b_hh, *, block_b=256,
              mxu_dtype=jnp.bfloat16):
    """Convenience one-shot wrapper. For recurrent loops, call
    prepare_lstm_weights() once and reuse lstm_cell_prepared() per step."""
    w, b = prepare_lstm_weights(w_ih, w_hh, b_ih, b_hh, mxu_dtype=mxu_dtype)
    return lstm_cell_prepared(x, h0, c0, w, b, hidden_size=h0.shape[-1],
                              block_b=block_b, mxu_dtype=mxu_dtype)


def lstm_cell_reference(x, h0, c0, w_ih, w_hh, b_ih, b_hh):
    gates = x @ w_ih + h0 @ w_hh + b_ih + b_hh
    H = h0.shape[-1]
    i_g = jax.nn.sigmoid(gates[:, 0 * H:1 * H])
    f_g = jax.nn.sigmoid(gates[:, 1 * H:2 * H])
    g_g = jnp.tanh(gates[:, 2 * H:3 * H])
    o_g = jax.nn.sigmoid(gates[:, 3 * H:4 * H])
    c1 = f_g * c0 + i_g * g_g
    h1 = o_g * jnp.tanh(c1)
    return h1, c1


if __name__ == "__main__":
    # Small shapes consistent with the module's forward: (batch, input_size) etc.
    batch, input_size, hidden_size = 8, 32, 32

    key = jax.random.PRNGKey(0)
    k_x, k_h, k_c, k_wih, k_whh, k_bih, k_bhh = jax.random.split(key, 7)

    stdv = 1.0 / float(jnp.sqrt(hidden_size))
    # weight_ih ~ U(-stdv, stdv), as in init_weights()
    w_ih = jax.random.uniform(k_wih, (input_size, 4 * hidden_size),
                              jnp.float32, minval=-stdv, maxval=stdv)
    # weight_hh: orthogonal init (QR of a Gaussian), matching nn.init.orthogonal
    g = jax.random.normal(k_whh, (4 * hidden_size, hidden_size), jnp.float32)
    q, r = jnp.linalg.qr(g)
    q = q * jnp.sign(jnp.diag(r))[None, :]          # (4H, H), orthonormal columns
    w_hh = q.T                                      # (H, 4H)
    # Module inits biases to zero; small nonzero biases exercise the fused-bias path.
    b_ih = 0.1 * jax.random.normal(k_bih, (4 * hidden_size,), jnp.float32)
    b_hh = 0.1 * jax.random.normal(k_bhh, (4 * hidden_size,), jnp.float32)

    x = jax.random.normal(k_x, (batch, input_size), jnp.float32)
    h0 = jax.random.normal(k_h, (batch, hidden_size), jnp.float32)
    c0 = jax.random.normal(k_c, (batch, hidden_size), jnp.float32)

    h1_ref, c1_ref = lstm_cell_reference(x, h0, c0, w_ih, w_hh, b_ih, b_hh)

    # Default bf16-MXU path (f32 accumulate / f32 epilogue).
    h1, c1 = lstm_cell(x, h0, c0, w_ih, w_hh, b_ih, b_hh)
    jax.block_until_ready((h1, c1))
    assert h1.shape == (batch, hidden_size) and c1.shape == (batch, hidden_size)
    assert jnp.allclose(h1, h1_ref, atol=2e-2, rtol=2e-2)
    assert jnp.allclose(c1, c1_ref, atol=2e-2, rtol=2e-2)

    # f32-MXU path: tight check that the fused kernel matches the reference.
    h1f, c1f = lstm_cell(x, h0, c0, w_ih, w_hh, b_ih, b_hh, mxu_dtype=jnp.float32)
    jax.block_until_ready((h1f, c1f))
    assert jnp.allclose(h1f, h1_ref, atol=1e-5, rtol=1e-5)
    assert jnp.allclose(c1f, c1_ref, atol=1e-5, rtol=1e-5)

    print("KERNEL_OK")
</pallas_src>

<mosaic_0001>
module attributes {stable_mosaic.version = 11 : i64} {
  func.func @lstm_cell_kernel(%arg0: i32, %arg1: memref<8x64xbf16, #tpu.memory_space<vmem>>, %arg2: memref<8x128xf32, #tpu.memory_space<vmem>>, %arg3: memref<64x512xbf16, #tpu.memory_space<vmem>>, %arg4: memref<1x512xf32, #tpu.memory_space<vmem>>, %arg5: memref<8x128xf32, #tpu.memory_space<vmem>>, %arg6: memref<8x128xf32, #tpu.memory_space<vmem>>) attributes {dimension_semantics = [#tpu.dimension_semantics<parallel>], iteration_bounds = array<i64: 1>, scalar_prefetch = 0 : i64, scratch_operands = 0 : i64, tpu.core_type = #tpu.core_type<tc>, window_params = [{transform_indices = @transform_0, window_bounds = array<i64: 8, 64>}, {transform_indices = @transform_1, window_bounds = array<i64: 8, 128>}, {pipeline_mode = #tpu.pipeline_mode<synchronous>, transform_indices = @transform_2, window_bounds = array<i64: 64, 512>}, {pipeline_mode = #tpu.pipeline_mode<synchronous>, transform_indices = @transform_3, window_bounds = array<i64: 1, 512>}, {transform_indices = @transform_4, window_bounds = array<i64: 8, 128>}, {transform_indices = @transform_5, window_bounds = array<i64: 8, 128>}]} {
    %c0 = arith.constant 0 : index
    %c0_0 = arith.constant 0 : index
    %0 = vector.load %arg1[%c0, %c0_0] : memref<8x64xbf16, #tpu.memory_space<vmem>>, vector<8x64xbf16>
    %c0_1 = arith.constant 0 : index
    %c0_2 = arith.constant 0 : index
    %1 = vector.load %arg3[%c0_1, %c0_2] : memref<64x512xbf16, #tpu.memory_space<vmem>>, vector<64x512xbf16>
    %cst = arith.constant dense<0.000000e+00> : vector<8x512xf32>
    %2 = tpu.matmul %0, %1, %cst {dimension_numbers = #tpu.dot_dimension_numbers<[1], [0], [0], [1], [0, 0, 1, 1], [], []>} : vector<8x64xbf16>, vector<64x512xbf16>, vector<8x512xf32> -> vector<8x512xf32>
    %c0_3 = arith.constant 0 : index
    %c0_4 = arith.constant 0 : index
    %3 = vector.load %arg4[%c0_3, %c0_4] : memref<1x512xf32, #tpu.memory_space<vmem>>, vector<1x512xf32>
    %4 = vector.broadcast %3 : vector<1x512xf32> to vector<8x512xf32>
    %5 = arith.addf %2, %4 : vector<8x512xf32>
    %6 = vector.extract_strided_slice %5 {offsets = [0, 0], sizes = [8, 128], strides = [1, 1]} : vector<8x512xf32> to vector<8x128xf32>
    %cst_5 = arith.constant 5.000000e-01 : f32
    %7 = vector.broadcast %cst_5 : f32 to vector<8x128xf32>
    %8 = arith.mulf %7, %6 : vector<8x128xf32>
    %9 = math.tanh %8 : vector<8x128xf32>
    %cst_6 = arith.constant 5.000000e-01 : f32
    %10 = vector.broadcast %cst_6 : f32 to vector<8x128xf32>
    %11 = arith.mulf %10, %9 : vector<8x128xf32>
    %cst_7 = arith.constant 5.000000e-01 : f32
    %12 = vector.broadcast %cst_7 : f32 to vector<8x128xf32>
    %13 = arith.addf %11, %12 : vector<8x128xf32>
    %14 = vector.extract_strided_slice %5 {offsets = [0, 128], sizes = [8, 128], strides = [1, 1]} : vector<8x512xf32> to vector<8x128xf32>
    %cst_8 = arith.constant 5.000000e-01 : f32
    %15 = vector.broadcast %cst_8 : f32 to vector<8x128xf32>
    %16 = arith.mulf %15, %14 : vector<8x128xf32>
    %17 = math.tanh %16 : vector<8x128xf32>
    %cst_9 = arith.constant 5.000000e-01 : f32
    %18 = vector.broadcast %cst_9 : f32 to vector<8x128xf32>
    %19 = arith.mulf %18, %17 : vector<8x128xf32>
    %cst_10 = arith.constant 5.000000e-01 : f32
    %20 = vector.broadcast %cst_10 : f32 to vector<8x128xf32>
    %21 = arith.addf %19, %20 : vector<8x128xf32>
    %22 = vector.extract_strided_slice %5 {offsets = [0, 256], sizes = [8, 128], strides = [1, 1]} : vector<8x512xf32> to vector<8x128xf32>
    %23 = math.tanh %22 : vector<8x128xf32>
    %24 = vector.extract_strided_slice %5 {offsets = [0, 384], sizes = [8, 128], strides = [1, 1]} : vector<8x512xf32> to vector<8x128xf32>
    %cst_11 = arith.constant 5.000000e-01 : f32
    %25 = vector.broadcast %cst_11 : f32 to vector<8x128xf32>
    %26 = arith.mulf %25, %24 : vector<8x128xf32>
    %27 = math.tanh %26 : vector<8x128xf32>
    %cst_12 = arith.constant 5.000000e-01 : f32
    %28 = vector.broadcast %cst_12 : f32 to vector<8x128xf32>
    %29 = arith.mulf %28, %27 : vector<8x128xf32>
    %cst_13 = arith.constant 5.000000e-01 : f32
    %30 = vector.broadcast %cst_13 : f32 to vector<8x128xf32>
    %31 = arith.addf %29, %30 : vector<8x128xf32>
    %c0_14 = arith.constant 0 : index
    %c0_15 = arith.constant 0 : index
    %32 = vector.load %arg2[%c0_14, %c0_15] : memref<8x128xf32, #tpu.memory_space<vmem>>, vector<8x128xf32>
    %33 = arith.mulf %21, %32 : vector<8x128xf32>
    %34 = arith.mulf %13, %23 : vector<8x128xf32>
    %35 = arith.addf %33, %34 : vector<8x128xf32>
    %36 = math.tanh %35 : vector<8x128xf32>
    %37 = arith.mulf %31, %36 : vector<8x128xf32>
    %c0_16 = arith.constant 0 : index
    %c0_17 = arith.constant 0 : index
    %38 = vector.load %arg5[%c0_16, %c0_17] : memref<8x128xf32, #tpu.memory_space<vmem>>, vector<8x128xf32>
    tpu.vector_store %arg5[%c0_16, %c0_17], %37 {strides = array<i32>} : memref<8x128xf32, #tpu.memory_space<vmem>>, vector<8x128xf32>,
    %c0_18 = arith.constant 0 : index
    %c0_19 = arith.constant 0 : index
    %39 = vector.load %arg6[%c0_18, %c0_19] : memref<8x128xf32, #tpu.memory_space<vmem>>, vector<8x128xf32>
    tpu.vector_store %arg6[%c0_18, %c0_19], %35 {strides = array<i32>} : memref<8x128xf32, #tpu.memory_space<vmem>>, vector<8x128xf32>,
    return
  }
  func.func @transform_0(%arg0: i32) -> (i32, i32) {
    %c0_i32 = arith.constant 0 : i32
    %c0_i32_0 = arith.constant 0 : i32
    return %arg0, %c0_i32 : i32, i32
  }
  func.func @transform_1(%arg0: i32) -> (i32, i32) {
    %c0_i32 = arith.constant 0 : i32
    %c0_i32_0 = arith.constant 0 : i32
    return %arg0, %c0_i32 : i32, i32
  }
  func.func @transform_2(%arg0: i32) -> (i32, i32) {
    %c0_i32 = arith.constant 0 : i32
    %c0_i32_0 = arith.constant 0 : i32
    %c0_i32_1 = arith.constant 0 : i32
    return %c0_i32, %c0_i32_0 : i32, i32
  }
  func.func @transform_3(%arg0: i32) -> (i32, i32) {
    %c0_i32 = arith.constant 0 : i32
    %c0_i32_0 = arith.constant 0 : i32
    %c0_i32_1 = arith.constant 0 : i32
    return %c0_i32, %c0_i32_0 : i32, i32
  }
  func.func @transform_4(%arg0: i32) -> (i32, i32) {
    %c0_i32 = arith.constant 0 : i32
    %c0_i32_0 = arith.constant 0 : i32
    return %arg0, %c0_i32 : i32, i32
  }
  func.func @transform_5(%arg0: i32) -> (i32, i32) {
    %c0_i32 = arith.constant 0 : i32
    %c0_i32_0 = arith.constant 0 : i32
    return %arg0, %c0_i32 : i32, i32
  }
}

module attributes {stable_mosaic.version = 11 : i64} {
  func.func @lstm_cell_kernel(%arg0: i32, %arg1: memref<8x64xbf16, #tpu.memory_space<vmem>>, %arg2: memref<8x128xf32, #tpu.memory_space<vmem>>, %arg3: memref<64x512xbf16, #tpu.memory_space<vmem>>, %arg4: memref<1x512xf32, #tpu.memory_space<vmem>>, %arg5: memref<8x128xf32, #tpu.memory_space<vmem>>, %arg6: memref<8x128xf32, #tpu.memory_space<vmem>>) attributes {dimension_semantics = [#tpu.dimension_semantics<parallel>], iteration_bounds = array<i64: 1>, scalar_prefetch = 0 : i64, scratch_operands = 0 : i64, tpu.core_type = #tpu.core_type<tc>, window_params = [{transform_indices = @transform_0, window_bounds = array<i64: 8, 64>}, {transform_indices = @transform_1, window_bounds = array<i64: 8, 128>}, {pipeline_mode = #tpu.pipeline_mode<synchronous>, transform_indices = @transform_2, window_bounds = array<i64: 64, 512>}, {pipeline_mode = #tpu.pipeline_mode<synchronous>, transform_indices = @transform_3, window_bounds = array<i64: 1, 512>}, {transform_indices = @transform_4, window_bounds = array<i64: 8, 128>}, {transform_indices = @transform_5, window_bounds = array<i64: 8, 128>}]} {
    %c0 = arith.constant 0 : index
    %c0_0 = arith.constant 0 : index
    %0 = vector.load %arg1[%c0, %c0_0] : memref<8x64xbf16, #tpu.memory_space<vmem>>, vector<8x64xbf16>
    %c0_1 = arith.constant 0 : index
    %c0_2 = arith.constant 0 : index
    %1 = vector.load %arg3[%c0_1, %c0_2] : memref<64x512xbf16, #tpu.memory_space<vmem>>, vector<64x512xbf16>
    %cst = arith.constant dense<0.000000e+00> : vector<8x512xf32>
    %2 = tpu.matmul %0, %1, %cst {dimension_numbers = #tpu.dot_dimension_numbers<[1], [0], [0], [1], [0, 0, 1, 1], [], []>} : vector<8x64xbf16>, vector<64x512xbf16>, vector<8x512xf32> -> vector<8x512xf32>
    %c0_3 = arith.constant 0 : index
    %c0_4 = arith.constant 0 : index
    %3 = vector.load %arg4[%c0_3, %c0_4] : memref<1x512xf32, #tpu.memory_space<vmem>>, vector<1x512xf32>
    %4 = vector.broadcast %3 : vector<1x512xf32> to vector<8x512xf32>
    %5 = arith.addf %2, %4 : vector<8x512xf32>
    %6 = vector.extract_strided_slice %5 {offsets = [0, 0], sizes = [8, 128], strides = [1, 1]} : vector<8x512xf32> to vector<8x128xf32>
    %cst_5 = arith.constant 5.000000e-01 : f32
    %7 = vector.broadcast %cst_5 : f32 to vector<8x128xf32>
    %8 = arith.mulf %7, %6 : vector<8x128xf32>
    %9 = math.tanh %8 : vector<8x128xf32>
    %cst_6 = arith.constant 5.000000e-01 : f32
    %10 = vector.broadcast %cst_6 : f32 to vector<8x128xf32>
    %11 = arith.mulf %10, %9 : vector<8x128xf32>
    %cst_7 = arith.constant 5.000000e-01 : f32
    %12 = vector.broadcast %cst_7 : f32 to vector<8x128xf32>
    %13 = arith.addf %11, %12 : vector<8x128xf32>
    %14 = vector.extract_strided_slice %5 {offsets = [0, 128], sizes = [8, 128], strides = [1, 1]} : vector<8x512xf32> to vector<8x128xf32>
    %cst_8 = arith.constant 5.000000e-01 : f32
    %15 = vector.broadcast %cst_8 : f32 to vector<8x128xf32>
    %16 = arith.mulf %15, %14 : vector<8x128xf32>
    %17 = math.tanh %16 : vector<8x128xf32>
    %cst_9 = arith.constant 5.000000e-01 : f32
    %18 = vector.broadcast %cst_9 : f32 to vector<8x128xf32>
    %19 = arith.mulf %18, %17 : vector<8x128xf32>
    %cst_10 = arith.constant 5.000000e-01 : f32
    %20 = vector.broadcast %cst_10 : f32 to vector<8x128xf32>
    %21 = arith.addf %19, %20 : vector<8x128xf32>
    %22 = vector.extract_strided_slice %5 {offsets = [0, 256], sizes = [8, 128], strides = [1, 1]} : vector<8x512xf32> to vector<8x128xf32>
    %23 = math.tanh %22 : vector<8x128xf32>
    %24 = vector.extract_strided_slice %5 {offsets = [0, 384], sizes = [8, 128], strides = [1, 1]} : vector<8x512xf32> to vector<8x128xf32>
    %cst_11 = arith.constant 5.000000e-01 : f32
    %25 = vector.broadcast %cst_11 : f32 to vector<8x128xf32>
    %26 = arith.mulf %25, %24 : vector<8x128xf32>
    %27 = math.tanh %26 : vector<8x128xf32>
    %cst_12 = arith.constant 5.000000e-01 : f32
    %28 = vector.broadcast %cst_12 : f32 to vector<8x128xf32>
    %29 = arith.mulf %28, %27 : vector<8x128xf32>
    %cst_13 = arith.constant 5.000000e-01 : f32
    %30 = vector.broadcast %cst_13 : f32 to vector<8x128xf32>
    %31 = arith.addf %29, %30 : vector<8x128xf32>
    %c0_14 = arith.constant 0 : index
    %c0_15 = arith.constant 0 : index
    %32 = vector.load %arg2[%c0_14, %c0_15] : memref<8x128xf32, #tpu.memory_space<vmem>>, vector<8x128xf32>
    %33 = arith.mulf %21, %32 : vector<8x128xf32>
    %34 = arith.mulf %13, %23 : vector<8x128xf32>
    %35 = arith.addf %33, %34 : vector<8x128xf32>
    %36 = math.tanh %35 : vector<8x128xf32>
    %37 = arith.mulf %31, %36 : vector<8x128xf32>
    %c0_16 = arith.constant 0 : index
    %c0_17 = arith.constant 0 : index
    %38 = vector.load %arg5[%c0_16, %c0_17] : memref<8x128xf32, #tpu.memory_space<vmem>>, vector<8x128xf32>
    tpu.vector_store %arg5[%c0_16, %c0_17], %37 {strides = array<i32>} : memref<8x128xf32, #tpu.memory_space<vmem>>, vector<8x128xf32>,
    %c0_18 = arith.constant 0 : index
    %c0_19 = arith.constant 0 : index
    %39 = vector.load %arg6[%c0_18, %c0_19] : memref<8x128xf32, #tpu.memory_space<vmem>>, vector<8x128xf32>
    tpu.vector_store %arg6[%c0_18, %c0_19], %35 {strides = array<i32>} : memref<8x128xf32, #tpu.memory_space<vmem>>, vector<8x128xf32>,
    return
  }
  func.func @transform_0(%arg0: i32) -> (i32, i32) {
    %c0_i32 = arith.constant 0 : i32
    %c0_i32_0 = arith.constant 0 : i32
    return %arg0, %c0_i32 : i32, i32
  }
  func.func @transform_1(%arg0: i32) -> (i32, i32) {
    %c0_i32 = arith.constant 0 : i32
    %c0_i32_0 = arith.constant 0 : i32
    return %arg0, %c0_i32 : i32, i32
  }
  func.func @transform_2(%arg0: i32) -> (i32, i32) {
    %c0_i32 = arith.constant 0 : i32
    %c0_i32_0 = arith.constant 0 : i32
    %c0_i32_1 = arith.constant 0 : i32
    return %c0_i32, %c0_i32_0 : i32, i32
  }
  func.func @transform_3(%arg0: i32) -> (i32, i32) {
    %c0_i32 = arith.constant 0 : i32
    %c0_i32_0 = arith.constant 0 : i32
    %c0_i32_1 = arith.constant 0 : i32
    return %c0_i32, %c0_i32_0 : i32, i32
  }
  func.func @transform_4(%arg0: i32) -> (i32, i32) {
    %c0_i32 = arith.constant 0 : i32
    %c0_i32_0 = arith.constant 0 : i32
    return %arg0, %c0_i32 : i32, i32
  }
  func.func @transform_5(%arg0: i32) -> (i32, i32) {
    %c0_i32 = arith.constant 0 : i32
    %c0_i32_0 = arith.constant 0 : i32
    return %arg0, %c0_i32 : i32, i32
  }
}

</mosaic_0001>

<bundles_post_ra>
// kernel: tpu_custom_call.1
= control target key start
LH: loop header
LB: loop body
LE: loop exit
PB: predicated region body
PF: predicated region fallthrough
CT: control target
= control target key end

     0   :  { %11 = vsyncpa [#allocation3], 0  ;;  %s594_s0 = inlined_call_operand.hbm [shape: bf16[8,64], index: 0, kind: input, shape index: {}]   ;;  %s595_s1 = inlined_call_operand.hbm [shape: f32[8,128], index: 1, kind: input, shape index: {}]   ;;  %s596_s2 = inlined_call_operand.hbm [shape: bf16[64,512], index: 2, kind: input, shape index: {}]   ;;  %s597_s3 = inlined_call_operand.vmem [shape: f32[1,512], index: 3, kind: input, shape index: {}]   ;;  %s598_s4 = inlined_call_operand.hbm [shape: f32[8,128], index: 4, kind: output, shape index: {0}]   ;;  %s599_s5 = inlined_call_operand.hbm [shape: f32[8,128], index: 5, kind: output, shape index: {1}]  }
   0x1   :  { %12 = vsyncpa [#allocation6], 0 }
   0x2   :  { %13 = vsyncpa [#allocation4], 0 }
   0x3   :  { %14 = vsyncpa [#allocation10], 0  ;;  %s493_s18 = smov [#allocation5]   ;;  %s494_s20 = smov [#allocation2]  }
   0x4   :  { %s31_s19 = sshll.u32 %s493_s18, 4  ;;  %s21_s21 = sshll.u32 %s494_s20, 4  ;;  %s32_s19 = int_to_ptr.vmem [resolvable:$true] %s31_s19  ;;  %s22_s21 = int_to_ptr.vmem [resolvable:$true] %s21_s21 }
   0x5   :  { %s375_s24 = scalar_lea.hbm %s595_s1, 128 }
   0x6   :  { %p376_p0 = scmp.ne.s32.totalorder %s595_s1, %s375_s24  ;;  %p379_p1 = scmp.lt.u32.totalorder %s375_s24, %s595_s1 }
   0x8   :  { %p381_p2 = pnand %p379_p1, %p376_p0 }
   0xa   :  { %384 = shalt.err (!%p381_p2)
}
   0xb   :  { %s385_s29 = scalar_lea.vmem %s32_s19, 128  ;;  %p390_p4 = scmp.lt.s32.totalorder %s32_s19, %s32_s19 }
   0xc   :  { %p386_p3 = scmp.ne.s32.totalorder %s32_s19, %s385_s29  ;;  %p391_p5 = scmp.lt.s32.totalorder %s385_s29, %s385_s29 }
   0xe   :  { %p392_p6 = por %p391_p5, %p390_p4 }
  0x10   :  { %p393_p7 = pnand %p392_p6, %p386_p3 }
  0x12   :  { %396 = shalt.err (!%p393_p7)
}
  0x13   :  { %34 = dma.hbm_to_vmem [thread:$0]  %s595_s1, 128, %s32_s19, [#allocation6]  }
  0x14   :  { %s397_s9 = scalar_lea.hbm %s594_s0, 64 }
  0x15   :  { %p398_p8 = scmp.ne.s32.totalorder %s594_s0, %s397_s9  ;;  %p401_p9 = scmp.lt.u32.totalorder %s397_s9, %s594_s0 }
  0x17   :  { %p403_p10 = pnand %p401_p9, %p398_p8 }
  0x19   :  { %406 = shalt.err (!%p403_p10)
}
  0x1a   :  { %s407_s14 = scalar_lea.vmem %s22_s21, 64  ;;  %p412_p12 = scmp.lt.s32.totalorder %s22_s21, %s22_s21 }
  0x1b   :  { %p408_p11 = scmp.ne.s32.totalorder %s22_s21, %s407_s14  ;;  %p413_p13 = scmp.lt.s32.totalorder %s407_s14, %s407_s14 }
  0x1d   :  { %p414_p0 = por %p413_p13, %p412_p12 }
  0x1f   :  { %p415_p1 = pnand %p414_p0, %p408_p11 }
  0x21   :  { %418 = shalt.err (!%p415_p1)
}
  0x22   :  { %24 = dma.hbm_to_vmem [thread:$0]  %s594_s0, 64, %s22_s21, [#allocation3]  }
  0x23   :  { %s495_s16 = smov [#allocation7]   ;;  %s419_s20 = scalar_lea.hbm %s596_s2, 2048 }
  0x24   :  { %s40_s17 = sshll.u32 %s495_s16, 4  ;;  %p420_p2 = scmp.ne.s32.totalorder %s596_s2, %s419_s20  ;;  %s41_s17 = int_to_ptr.vmem [resolvable:$true] %s40_s17 }
  0x25   :  { %p423_p3 = scmp.lt.u32.totalorder %s419_s20, %s596_s2 }
  0x27   :  { %p425_p4 = pnand %p423_p3, %p420_p2 }
  0x29   :  { %428 = shalt.err (!%p425_p4)
}
  0x2a   :  { %s429_s26 = scalar_lea.vmem %s41_s17, 2048  ;;  %p434_p6 = scmp.lt.s32.totalorder %s41_s17, %s41_s17 }
  0x2b   :  { %p430_p5 = scmp.ne.s32.totalorder %s41_s17, %s429_s26  ;;  %p435_p7 = scmp.lt.s32.totalorder %s429_s26, %s429_s26 }
  0x2d   :  { %p436_p8 = por %p435_p7, %p434_p6 }
  0x2f   :  { %p437_p9 = pnand %p436_p8, %p430_p5 }
  0x31   :  { %440 = shalt.err (!%p437_p9)
}
  0x32   :  { %s496_s0 = smov 256   ;;  %s497_s21 = smov 16  }
  0x33   :  { %46 = dma.hbm_to_vmem [thread:$0]  %s596_s2, 2048, %s41_s17, [#allocation6], %s496_s0, %s496_s0, %s497_s21  }
  0x34   :  { %485 = dma.done.wait [#allocation3], 64  }
  0x35   :  { %486 = vsyncadd [#allocation3], 4294967232 }
  0x36   :  { %487 = dma.done.wait [#allocation6], 2176  }
  0x37   :  { %488 = vsyncadd [#allocation6], 4294965120  ;;  %v498_v0 = vmov 0   ;;  %v341_v1 = vld [vmem:[#allocation7 + $0x4] ss:$16 sps:$4 sm:$0xff]   ;;  %vm178_vm0 = vcmask 523264   ;;  %v78_v18 = vlaneseq }
  0x38   :  { %214 = vmatprep.mubr.bf16.mxu0 %v498_v0  ;;  %255 = vmatprep.mubr.bf16.mxu1 %v498_v0  ;;  %v343_v2 = vld [vmem:[#allocation7] ss:$16 sps:$4 sm:$0xff]   ;;  %v344_v3 = vld [vmem:[#allocation7 + $0x24] ss:$16 sps:$4 sm:$0xff]   ;;  %v346_v4 = vld [vmem:[#allocation7 + $0xc] ss:$16 sps:$4 sm:$0xff]  }
  0x39   :  { %182 = vmatprep.subr.bf16.mxu0 %v341_v1  ;;  %v348_v5 = vld [vmem:[#allocation7 + $0x20] ss:$16 sps:$4 sm:$0xff]   ;;  %v349_v6 = vld [vmem:[#allocation7 + $0x8] ss:$16 sps:$4 sm:$0xff]   ;;  %v350_v7 = vld [vmem:[#allocation7 + $0x44] ss:$16 sps:$4 sm:$0xff]   ;;  %223 = vmatprep.subr.bf16.mxu1 %v346_v4 }
  0x3a   :  { %183 = vmatpush1.bf16.msra.mxu0 %v343_v2  ;;  %v352_v8 = vld [vmem:[#allocation7 + $0x2c] ss:$16 sps:$4 sm:$0xff]   ;;  %224 = vmatpush1.bf16.msra.mxu1 %v349_v6  ;;  %v355_v9 = vld [vmem:[#allocation7 + $0x28] ss:$16 sps:$4 sm:$0xff]   ;;  %v354_v10 = vld [vmem:[#allocation7 + $0x40] ss:$16 sps:$4 sm:$0xff]  }
  0x3b   :  { %184 = vmatprep.subr.bf16.mxu0 %v344_v3  ;;  %225 = vmatprep.subr.bf16.mxu1 %v352_v8  ;;  %v356_v11 = vld [vmem:[#allocation7 + $0x64] ss:$16 sps:$4 sm:$0xff]   ;;  %v358_v12 = vld [vmem:[#allocation7 + $0x4c] ss:$16 sps:$4 sm:$0xff]   ;;  %v361_v13 = vld [vmem:[#allocation7 + $0x48] ss:$16 sps:$4 sm:$0xff]  }
  0x3c   :  { %v360_v14 = vld [vmem:[#allocation7 + $0x60] ss:$16 sps:$4 sm:$0xff]   ;;  %v362_v15 = vld [vmem:[#allocation7 + $0x6c] ss:$16 sps:$4 sm:$0xff]   ;;  %v364_v16 = vld [vmem:[#allocation7 + $0x68] ss:$16 sps:$4 sm:$0xff]  }
  0x3d   :  { %v59_v17 = vld [vmem:[#allocation2] sm:$0xf]  ;;  %v79_v19 = vshrl.u32 %v78_v18, 7  ;;  %v277_v50 = vld [vmem:[#allocation5] sm:$0xff] }
  0x3e   :  { %185 = vmatpush1.bf16.msra.mxu0 %v348_v5  ;;  %226 = vmatpush1.bf16.msra.mxu1 %v355_v9  ;;  %v76_v21 = vld [vmem:[%s597_s3] sm:$0xf]  ;;  %s499_s3 = smov [#allocation9]  }
  0x3f   :  { %186 = vmatprep.subr.bf16.mxu0 %v350_v7  ;;  %227 = vmatprep.subr.bf16.mxu1 %v358_v12  ;;  %v80_v20 = vsub.s32 0, %v79_v19  ;;  %v84_v22 = vsub.s32 1, %v79_v19  ;;  %v88_v23 = vsub.s32 2, %v79_v19  ;;  %v92_v30 = vsub.s32 3, %v79_v19  ;;  %s301_s30 = sshll.u32 %s499_s3, 4  ;;  %s302_s30 = int_to_ptr.vmem [resolvable:$true] %s301_s30 }
  0x40   :  { %s441_s6 = scalar_lea.vmem %s302_s30, 128  ;;  %p446_p11 = scmp.lt.s32.totalorder %s302_s30, %s302_s30 }
  0x41   :  { %v81_v24 = vrot.slane %v76_v21, %v80_v20  ;;  %v85_v25 = vrot.slane %v76_v21, %v84_v22  ;;  %v89_v27 = vrot.slane %v76_v21, %v88_v23  ;;  %v93_v39 = vrot.slane %v76_v21, %v92_v30  ;;  %p442_p10 = scmp.ne.s32.totalorder %s302_s30, %s441_s6  ;;  %p447_p12 = scmp.lt.s32.totalorder %s441_s6, %s441_s6 }
  0x42   :  { %187 = vmatpush1.bf16.msra.mxu0 %v354_v10  ;;  %228 = vmatpush1.bf16.msra.mxu1 %v361_v13 }
  0x43   :  { %188 = vmatprep.subr.bf16.mxu0 %v356_v11  ;;  %229 = vmatprep.subr.bf16.mxu1 %v362_v15  ;;  %p448_p13 = por %p447_p12, %p446_p11 }
  0x45   :  { %p449_p0 = pnand %p448_p13, %p442_p10 }
  0x46   :  { %189 = vmatpush1.bf16.msra.mxu0 %v360_v14  ;;  %230 = vmatpush1.bf16.msra.mxu1 %v364_v16 }
  0x49   :  { %331 = vmatmul.mubr.msk.bf16.vlgmr.msra.gmra.mrb[0].mxu0 %vm178_vm0, %v59_v17  ;;  %332 = vmatmul.mubr.msk.bf16.vlgmr.msra.gmra.mrb[0].mxu1 %vm178_vm0, %v59_v17 }
 0x11c   :  { %v216_v26 = vpop.f32.mrb[0].mxu0  ;;  %v257_v35 = vpop.f32.mrb[0].mxu1 }
 0x11d   :  { %v217_v28 = vadd.f32 %v216_v26, %v81_v24  ;;  %v218_v29 = vpop.f32.mrb[1].mxu0  ;;  %v258_v37 = vadd.f32 %v257_v35, %v89_v27  ;;  %v259_v38 = vpop.f32.mrb[1].mxu1 }
 0x11e   :  { %v219_v31 = vadd.f32 %v218_v29, %v85_v25  ;;  %v220_v32 = vpop.f32.mrb[2].mxu0  ;;  %v261_v40 = vpop.f32.mrb[2].mxu1  ;;  %v260_v42 = vadd.f32 %v259_v38, %v93_v39 }
 0x11f   :  { %v264_v33 = vmul.f32 0.5, %v217_v28  ;;  %v221_v34 = vpop.f32.mrb[3].mxu0  ;;  %v262_v41 = vpop.f32.mrb[3].mxu1 }
 0x120   :  { %v268_v36 = vmul.f32 0.5, %v219_v31  ;;  %v273_v43 = vmul.f32 0.5, %v260_v42 }
 0x121   :  { %365 = vtanh.f32 %v264_v33 }
 0x122   :  { %367 = vtanh.f32 %v268_v36 }
 0x123   :  { %369 = vtanh.f32 %v258_v37 }
 0x124   :  { %371 = vtanh.f32 %v273_v43 }
 0x12b   :  { %v366_v44 = vpop.eup %365 }
 0x12c   :  { %v368_v45 = vpop.eup %367  ;;  %v266_v46 = vmul.f32 0.5, %v366_v44 }
 0x12d   :  { %v370_v47 = vpop.eup %369  ;;  %v270_v48 = vmul.f32 0.5, %v368_v45 }
 0x12e   :  { %v267_v49 = vadd.f32 0.5, %v266_v46 }
 0x12f   :  { %v271_v51 = vadd.f32 0.5, %v270_v48 }
 0x130   :  { %v279_v52 = vmul.f32 %v370_v47, %v267_v49 }
 0x131   :  { %v278_v53 = vmul.f32 %v277_v50, %v271_v51 }
 0x133   :  { %v280_v54 = vadd.f32 %v279_v52, %v278_v53 }
 0x135   :  { %284 = vst [vmem:[#allocation9] sm:$0xff] %v280_v54  ;;  %373 = vtanh.f32 %v280_v54 }
 0x136   :  { %452 = shalt.err (!%p449_p0)
}
 0x137   :  { %s453_s9 = scalar_lea.hbm %s599_s5, 128 }
 0x138   :  { %p454_p1 = scmp.ne.s32.totalorder %s599_s5, %s453_s9  ;;  %p457_p2 = scmp.lt.u32.totalorder %s453_s9, %s599_s5 }
 0x13a   :  { %p459_p3 = pnand %p457_p2, %p454_p1 }
 0x13c   :  { %462 = shalt.err (!%p459_p3)
}
 0x13d   :  { %304 = dma.vmem_to_hbm [thread:$0]  %s302_s30, 128, %s599_s5, [#allocation10]   ;;  %v372_v55 = vpop.eup %371 }
 0x13e   :  { %v275_v56 = vmul.f32 0.5, %v372_v55  ;;  %s500_s15 = smov [#allocation8]  }
 0x13f   :  { %s291_s16 = sshll.u32 %s500_s15, 4  ;;  %v374_v58 = vpop.eup %373  ;;  %s292_s16 = int_to_ptr.vmem [resolvable:$true] %s291_s16 }
 0x140   :  { %v276_v57 = vadd.f32 0.5, %v275_v56  ;;  %s463_s17 = scalar_lea.vmem %s292_s16, 128  ;;  %p468_p5 = scmp.lt.s32.totalorder %s292_s16, %s292_s16 }
 0x141   :  { %p464_p4 = scmp.ne.s32.totalorder %s292_s16, %s463_s17  ;;  %p469_p6 = scmp.lt.s32.totalorder %s463_s17, %s463_s17 }
 0x142   :  { %v282_v59 = vmul.f32 %v374_v58, %v276_v57 }
 0x143   :  { %p470_p7 = por %p469_p6, %p468_p5 }
 0x144   :  { %283 = vst [vmem:[#allocation8] sm:$0xff] %v282_v59 }
 0x145   :  { %p471_p8 = pnand %p470_p7, %p464_p4 }
 0x147   :  { %474 = shalt.err (!%p471_p8)
}
 0x148   :  { %s475_s5 = scalar_lea.hbm %s598_s4, 128 }
 0x149   :  { %p476_p9 = scmp.ne.s32.totalorder %s598_s4, %s475_s5  ;;  %p479_p10 = scmp.lt.u32.totalorder %s475_s5, %s598_s4 }
 0x14b   :  { %p481_p11 = pnand %p479_p10, %p476_p9 }
 0x14d   :  { %484 = shalt.err (!%p481_p11)
}
 0x14e   :  { %294 = dma.vmem_to_hbm [thread:$0]  %s292_s16, 128, %s598_s4, [#allocation4]  }
 0x14f   :  { %489 = dma.done.wait [#allocation4], 128  }
 0x150   :  { %490 = vsyncadd [#allocation4], 4294967168 }
 0x151   :  { %491 = dma.done.wait [#allocation10], 128  }
 0x152   :  { %492 = vsyncadd [#allocation10], 4294967168 }
 0x153   :  { %311 = vsyncpa [#allocation3], 1 }
 0x154   :  { %312 = vsyncpa [#allocation6], 1 }
 0x155   :  { %313 = vsyncpa [#allocation4], 1 }
 0x156   :  { %314 = vsyncpa [#allocation10], 1 }

// kernel: tpu_custom_call.1
= control target key start
LH: loop header
LB: loop body
LE: loop exit
PB: predicated region body
PF: predicated region fallthrough
CT: control target
= control target key end

     0   :  { %11 = vsyncpa [#allocation3], 0  ;;  %s594_s0 = inlined_call_operand.hbm [shape: bf16[8,64], index: 0, kind: input, shape index: {}]   ;;  %s595_s1 = inlined_call_operand.hbm [shape: f32[8,128], index: 1, kind: input, shape index: {}]   ;;  %s596_s2 = inlined_call_operand.hbm [shape: bf16[64,512], index: 2, kind: input, shape index: {}]   ;;  %s597_s3 = inlined_call_operand.vmem [shape: f32[1,512], index: 3, kind: input, shape index: {}]   ;;  %s598_s4 = inlined_call_operand.hbm [shape: f32[8,128], index: 4, kind: output, shape index: {0}]   ;;  %s599_s5 = inlined_call_operand.hbm [shape: f32[8,128], index: 5, kind: output, shape index: {1}]  }
   0x1   :  { %12 = vsyncpa [#allocation6], 0 }
   0x2   :  { %13 = vsyncpa [#allocation4], 0 }
   0x3   :  { %14 = vsyncpa [#allocation10], 0  ;;  %s493_s18 = smov [#allocation5]   ;;  %s494_s20 = smov [#allocation2]  }
   0x4   :  { %s31_s19 = sshll.u32 %s493_s18, 4  ;;  %s21_s21 = sshll.u32 %s494_s20, 4  ;;  %s32_s19 = int_to_ptr.vmem [resolvable:$true] %s31_s19  ;;  %s22_s21 = int_to_ptr.vmem [resolvable:$true] %s21_s21 }
   0x5   :  { %s375_s24 = scalar_lea.hbm %s595_s1, 128 }
   0x6   :  { %p376_p0 = scmp.ne.s32.totalorder %s595_s1, %s375_s24  ;;  %p379_p1 = scmp.lt.u32.totalorder %s375_s24, %s595_s1 }
   0x8   :  { %p381_p2 = pnand %p379_p1, %p376_p0 }
   0xa   :  { %384 = shalt.err (!%p381_p2)
}
   0xb   :  { %s385_s29 = scalar_lea.vmem %s32_s19, 128  ;;  %p390_p4 = scmp.lt.s32.totalorder %s32_s19, %s32_s19 }
   0xc   :  { %p386_p3 = scmp.ne.s32.totalorder %s32_s19, %s385_s29  ;;  %p391_p5 = scmp.lt.s32.totalorder %s385_s29, %s385_s29 }
   0xe   :  { %p392_p6 = por %p391_p5, %p390_p4 }
  0x10   :  { %p393_p7 = pnand %p392_p6, %p386_p3 }
  0x12   :  { %396 = shalt.err (!%p393_p7)
}
  0x13   :  { %34 = dma.hbm_to_vmem [thread:$0]  %s595_s1, 128, %s32_s19, [#allocation6]  }
  0x14   :  { %s397_s9 = scalar_lea.hbm %s594_s0, 64 }
  0x15   :  { %p398_p8 = scmp.ne.s32.totalorder %s594_s0, %s397_s9  ;;  %p401_p9 = scmp.lt.u32.totalorder %s397_s9, %s594_s0 }
  0x17   :  { %p403_p10 = pnand %p401_p9, %p398_p8 }
  0x19   :  { %406 = shalt.err (!%p403_p10)
}
  0x1a   :  { %s407_s14 = scalar_lea.vmem %s22_s21, 64  ;;  %p412_p12 = scmp.lt.s32.totalorder %s22_s21, %s22_s21 }
  0x1b   :  { %p408_p11 = scmp.ne.s32.totalorder %s22_s21, %s407_s14  ;;  %p413_p13 = scmp.lt.s32.totalorder %s407_s14, %s407_s14 }
  0x1d   :  { %p414_p0 = por %p413_p13, %p412_p12 }
  0x1f   :  { %p415_p1 = pnand %p414_p0, %p408_p11 }
  0x21   :  { %418 = shalt.err (!%p415_p1)
}
  0x22   :  { %24 = dma.hbm_to_vmem [thread:$0]  %s594_s0, 64, %s22_s21, [#allocation3]  }
  0x23   :  { %s495_s16 = smov [#allocation7]   ;;  %s419_s20 = scalar_lea.hbm %s596_s2, 2048 }
  0x24   :  { %s40_s17 = sshll.u32 %s495_s16, 4  ;;  %p420_p2 = scmp.ne.s32.totalorder %s596_s2, %s419_s20  ;;  %s41_s17 = int_to_ptr.vmem [resolvable:$true] %s40_s17 }
  0x25   :  { %p423_p3 = scmp.lt.u32.totalorder %s419_s20, %s596_s2 }
  0x27   :  { %p425_p4 = pnand %p423_p3, %p420_p2 }
  0x29   :  { %428 = shalt.err (!%p425_p4)
}
  0x2a   :  { %s429_s26 = scalar_lea.vmem %s41_s17, 2048  ;;  %p434_p6 = scmp.lt.s32.totalorder %s41_s17, %s41_s17 }
  0x2b   :  { %p430_p5 = scmp.ne.s32.totalorder %s41_s17, %s429_s26  ;;  %p435_p7 = scmp.lt.s32.totalorder %s429_s26, %s429_s26 }
  0x2d   :  { %p436_p8 = por %p435_p7, %p434_p6 }
  0x2f   :  { %p437_p9 = pnand %p436_p8, %p430_p5 }
  0x31   :  { %440 = shalt.err (!%p437_p9)
}
  0x32   :  { %s496_s0 = smov 256   ;;  %s497_s21 = smov 16  }
  0x33   :  { %46 = dma.hbm_to_vmem [thread:$0]  %s596_s2, 2048, %s41_s17, [#allocation6], %s496_s0, %s496_s0, %s497_s21  }
  0x34   :  { %485 = dma.done.wait [#allocation3], 64  }
  0x35   :  { %486 = vsyncadd [#allocation3], 4294967232 }
  0x36   :  { %487 = dma.done.wait [#allocation6], 2176  }
  0x37   :  { %488 = vsyncadd [#allocation6], 4294965120  ;;  %v498_v0 = vmov 0   ;;  %v341_v1 = vld [vmem:[#allocation7 + $0x4] ss:$16 sps:$4 sm:$0xff]   ;;  %vm178_vm0 = vcmask 523264   ;;  %v78_v18 = vlaneseq }
  0x38   :  { %214 = vmatprep.mubr.bf16.mxu0 %v498_v0  ;;  %255 = vmatprep.mubr.bf16.mxu1 %v498_v0  ;;  %v343_v2 = vld [vmem:[#allocation7] ss:$16 sps:$4 sm:$0xff]   ;;  %v344_v3 = vld [vmem:[#allocation7 + $0x24] ss:$16 sps:$4 sm:$0xff]   ;;  %v346_v4 = vld [vmem:[#allocation7 + $0xc] ss:$16 sps:$4 sm:$0xff]  }
  0x39   :  { %182 = vmatprep.subr.bf16.mxu0 %v341_v1  ;;  %v348_v5 = vld [vmem:[#allocation7 + $0x20] ss:$16 sps:$4 sm:$0xff]   ;;  %v349_v6 = vld [vmem:[#allocation7 + $0x8] ss:$16 sps:$4 sm:$0xff]   ;;  %v350_v7 = vld [vmem:[#allocation7 + $0x44] ss:$16 sps:$4 sm:$0xff]   ;;  %223 = vmatprep.subr.bf16.mxu1 %v346_v4 }
  0x3a   :  { %183 = vmatpush1.bf16.msra.mxu0 %v343_v2  ;;  %v352_v8 = vld [vmem:[#allocation7 + $0x2c] ss:$16 sps:$4 sm:$0xff]   ;;  %224 = vmatpush1.bf16.msra.mxu1 %v349_v6  ;;  %v355_v9 = vld [vmem:[#allocation7 + $0x28] ss:$16 sps:$4 sm:$0xff]   ;;  %v354_v10 = vld [vmem:[#allocation7 + $0x40] ss:$16 sps:$4 sm:$0xff]  }
  0x3b   :  { %184 = vmatprep.subr.bf16.mxu0 %v344_v3  ;;  %225 = vmatprep.subr.bf16.mxu1 %v352_v8  ;;  %v356_v11 = vld [vmem:[#allocation7 + $0x64] ss:$16 sps:$4 sm:$0xff]   ;;  %v358_v12 = vld [vmem:[#allocation7 + $0x4c] ss:$16 sps:$4 sm:$0xff]   ;;  %v361_v13 = vld [vmem:[#allocation7 + $0x48] ss:$16 sps:$4 sm:$0xff]  }
  0x3c   :  { %v360_v14 = vld [vmem:[#allocation7 + $0x60] ss:$16 sps:$4 sm:$0xff]   ;;  %v362_v15 = vld [vmem:[#allocation7 + $0x6c] ss:$16 sps:$4 sm:$0xff]   ;;  %v364_v16 = vld [vmem:[#allocation7 + $0x68] ss:$16 sps:$4 sm:$0xff]  }
  0x3d   :  { %v59_v17 = vld [vmem:[#allocation2] sm:$0xf]  ;;  %v79_v19 = vshrl.u32 %v78_v18, 7  ;;  %v277_v50 = vld [vmem:[#allocation5] sm:$0xff] }
  0x3e   :  { %185 = vmatpush1.bf16.msra.mxu0 %v348_v5  ;;  %226 = vmatpush1.bf16.msra.mxu1 %v355_v9  ;;  %v76_v21 = vld [vmem:[%s597_s3] sm:$0xf]  ;;  %s499_s3 = smov [#allocation9]  }
  0x3f   :  { %186 = vmatprep.subr.bf16.mxu0 %v350_v7  ;;  %227 = vmatprep.subr.bf16.mxu1 %v358_v12  ;;  %v80_v20 = vsub.s32 0, %v79_v19  ;;  %v84_v22 = vsub.s32 1, %v79_v19  ;;  %v88_v23 = vsub.s32 2, %v79_v19  ;;  %v92_v30 = vsub.s32 3, %v79_v19  ;;  %s301_s30 = sshll.u32 %s499_s3, 4  ;;  %s302_s30 = int_to_ptr.vmem [resolvable:$true] %s301_s30 }
  0x40   :  { %s441_s6 = scalar_lea.vmem %s302_s30, 128  ;;  %p446_p11 = scmp.lt.s32.totalorder %s302_s30, %s302_s30 }
  0x41   :  { %v81_v24 = vrot.slane %v76_v21, %v80_v20  ;;  %v85_v25 = vrot.slane %v76_v21, %v84_v22  ;;  %v89_v27 = vrot.slane %v76_v21, %v88_v23  ;;  %v93_v39 = vrot.slane %v76_v21, %v92_v30  ;;  %p442_p10 = scmp.ne.s32.totalorder %s302_s30, %s441_s6  ;;  %p447_p12 = scmp.lt.s32.totalorder %s441_s6, %s441_s6 }
  0x42   :  { %187 = vmatpush1.bf16.msra.mxu0 %v354_v10  ;;  %228 = vmatpush1.bf16.msra.mxu1 %v361_v13 }
  0x43   :  { %188 = vmatprep.subr.bf16.mxu0 %v356_v11  ;;  %229 = vmatprep.subr.bf16.mxu1 %v362_v15  ;;  %p448_p13 = por %p447_p12, %p446_p11 }
  0x45   :  { %p449_p0 = pnand %p448_p13, %p442_p10 }
  0x46   :  { %189 = vmatpush1.bf16.msra.mxu0 %v360_v14  ;;  %230 = vmatpush1.bf16.msra.mxu1 %v364_v16 }
  0x49   :  { %331 = vmatmul.mubr.msk.bf16.vlgmr.msra.gmra.mrb[0].mxu0 %vm178_vm0, %v59_v17  ;;  %332 = vmatmul.mubr.msk.bf16.vlgmr.msra.gmra.mrb[0].mxu1 %vm178_vm0, %v59_v17 }
 0x11c   :  { %v216_v26 = vpop.f32.mrb[0].mxu0  ;;  %v257_v35 = vpop.f32.mrb[0].mxu1 }
 0x11d   :  { %v217_v28 = vadd.f32 %v216_v26, %v81_v24  ;;  %v218_v29 = vpop.f32.mrb[1].mxu0  ;;  %v258_v37 = vadd.f32 %v257_v35, %v89_v27  ;;  %v259_v38 = vpop.f32.mrb[1].mxu1 }
 0x11e   :  { %v219_v31 = vadd.f32 %v218_v29, %v85_v25  ;;  %v220_v32 = vpop.f32.mrb[2].mxu0  ;;  %v261_v40 = vpop.f32.mrb[2].mxu1  ;;  %v260_v42 = vadd.f32 %v259_v38, %v93_v39 }
 0x11f   :  { %v264_v33 = vmul.f32 0.5, %v217_v28  ;;  %v221_v34 = vpop.f32.mrb[3].mxu0  ;;  %v262_v41 = vpop.f32.mrb[3].mxu1 }
 0x120   :  { %v268_v36 = vmul.f32 0.5, %v219_v31  ;;  %v273_v43 = vmul.f32 0.5, %v260_v42 }
 0x121   :  { %365 = vtanh.f32 %v264_v33 }
 0x122   :  { %367 = vtanh.f32 %v268_v36 }
 0x123   :  { %369 = vtanh.f32 %v258_v37 }
 0x124   :  { %371 = vtanh.f32 %v273_v43 }
 0x12b   :  { %v366_v44 = vpop.eup %365 }
 0x12c   :  { %v368_v45 = vpop.eup %367  ;;  %v266_v46 = vmul.f32 0.5, %v366_v44 }
 0x12d   :  { %v370_v47 = vpop.eup %369  ;;  %v270_v48 = vmul.f32 0.5, %v368_v45 }
 0x12e   :  { %v267_v49 = vadd.f32 0.5, %v266_v46 }
 0x12f   :  { %v271_v51 = vadd.f32 0.5, %v270_v48 }
 0x130   :  { %v279_v52 = vmul.f32 %v370_v47, %v267_v49 }
 0x131   :  { %v278_v53 = vmul.f32 %v277_v50, %v271_v51 }
 0x133   :  { %v280_v54 = vadd.f32 %v279_v52, %v278_v53 }
 0x135   :  { %284 = vst [vmem:[#allocation9] sm:$0xff] %v280_v54  ;;  %373 = vtanh.f32 %v280_v54 }
 0x136   :  { %452 = shalt.err (!%p449_p0)
}
 0x137   :  { %s453_s9 = scalar_lea.hbm %s599_s5, 128 }
 0x138   :  { %p454_p1 = scmp.ne.s32.totalorder %s599_s5, %s453_s9  ;;  %p457_p2 = scmp.lt.u32.totalorder %s453_s9, %s599_s5 }
 0x13a   :  { %p459_p3 = pnand %p457_p2, %p454_p1 }
 0x13c   :  { %462 = shalt.err (!%p459_p3)
}
 0x13d   :  { %304 = dma.vmem_to_hbm [thread:$0]  %s302_s30, 128, %s599_s5, [#allocation10]   ;;  %v372_v55 = vpop.eup %371 }
 0x13e   :  { %v275_v56 = vmul.f32 0.5, %v372_v55  ;;  %s500_s15 = smov [#allocation8]  }
 0x13f   :  { %s291_s16 = sshll.u32 %s500_s15, 4  ;;  %v374_v58 = vpop.eup %373  ;;  %s292_s16 = int_to_ptr.vmem [resolvable:$true] %s291_s16 }
 0x140   :  { %v276_v57 = vadd.f32 0.5, %v275_v56  ;;  %s463_s17 = scalar_lea.vmem %s292_s16, 128  ;;  %p468_p5 = scmp.lt.s32.totalorder %s292_s16, %s292_s16 }
 0x141   :  { %p464_p4 = scmp.ne.s32.totalorder %s292_s16, %s463_s17  ;;  %p469_p6 = scmp.lt.s32.totalorder %s463_s17, %s463_s17 }
 0x142   :  { %v282_v59 = vmul.f32 %v374_v58, %v276_v57 }
 0x143   :  { %p470_p7 = por %p469_p6, %p468_p5 }
 0x144   :  { %283 = vst [vmem:[#allocation8] sm:$0xff] %v282_v59 }
 0x145   :  { %p471_p8 = pnand %p470_p7, %p464_p4 }
 0x147   :  { %474 = shalt.err (!%p471_p8)
}
 0x148   :  { %s475_s5 = scalar_lea.hbm %s598_s4, 128 }
 0x149   :  { %p476_p9 = scmp.ne.s32.totalorder %s598_s4, %s475_s5  ;;  %p479_p10 = scmp.lt.u32.totalorder %s475_s5, %s598_s4 }
 0x14b   :  { %p481_p11 = pnand %p479_p10, %p476_p9 }
 0x14d   :  { %484 = shalt.err (!%p481_p11)
}
 0x14e   :  { %294 = dma.vmem_to_hbm [thread:$0]  %s292_s16, 128, %s598_s4, [#allocation4]  }
 0x14f   :  { %489 = dma.done.wait [#allocation4], 128  }
 0x150   :  { %490 = vsyncadd [#allocation4], 4294967168 }
 0x151   :  { %491 = dma.done.wait [#allocation10], 128  }
 0x152   :  { %492 = vsyncadd [#allocation10], 4294967168 }
 0x153   :  { %311 = vsyncpa [#allocation3], 1 }
 0x154   :  { %312 = vsyncpa [#allocation6], 1 }
 0x155   :  { %313 = vsyncpa [#allocation4], 1 }
 0x156   :  { %314 = vsyncpa [#allocation10], 1 }

</bundles_post_ra>
